<compile_context>
chip_gen: v5e
topology: v5e:2x2
jax: 0.10.0
libtpu: 0.0.40
codegen_flags: <defaults>
</compile_context>

<pallas_src>
import functools

import jax
import jax.numpy as jnp
from jax import lax
from jax.experimental import pallas as pl
from jax.experimental.pallas import tpu as pltpu

_LANES = 128


def _ce_partial_kernel(x_ref, t_ref, o_ref, *, tile_hw, hw, needs_mask):
    """One (batch, hw-tile) block: partial sum of -log_softmax(x)[target]."""
    # x_ref: (1, C, TILE) logits; t_ref: (1, 1, TILE) int32 targets;
    # o_ref: (1, 1, 1, 128) partial-sum block (value broadcast over lanes).
    j = pl.program_id(1)

    x = x_ref[...].astype(jnp.float32)                       # (1, C, TILE)
    tgt = t_ref[...].astype(jnp.int32)                       # (1, 1, TILE)

    # Numerically-stable log-softmax pieces in a single sweep over (C, TILE):
    # loss = log(sum_c exp(x_c - m)) - (x_t - m)
    m = jnp.max(x, axis=1, keepdims=True)                    # (1, 1, TILE)
    xm = x - m                                               # (1, C, TILE)
    sum_exp = jnp.sum(jnp.exp(xm), axis=1, keepdims=True)    # (1, 1, TILE)

    cls_idx = lax.broadcasted_iota(jnp.int32, x.shape, 1)    # class id / sublane
    picked = jnp.sum(jnp.where(cls_idx == tgt, xm, 0.0),
                     axis=1, keepdims=True)                  # (1, 1, TILE) = x_t - m

    loss = jnp.log(sum_exp) - picked                         # per-pixel NLL

    if needs_mask:  # only the ragged last HW tile needs it (static decision)
        pix = lax.broadcasted_iota(jnp.int32, loss.shape, 2) + j * tile_hw
        loss = jnp.where(pix < hw, loss, 0.0)

    tile_sum = jnp.sum(loss)
    o_ref[...] = jnp.full(o_ref.shape, tile_sum, dtype=jnp.float32)


def cross_entropy_loss_2d(inputs, targets, *, max_block_bytes=4 << 20):
    """inputs: (N, C, H, W) float logits; targets: (N, H, W) int labels.

    Returns scalar mean cross-entropy over all N*H*W pixels, matching
    nn.CrossEntropyLoss(weight=None, size_average=True).
    """
    n, c, h, w = inputs.shape
    assert targets.shape == (n, h, w)
    hw = h * w

    # NCHW -> (N, C, HW): contiguous reshape only (no transpose, no pad).
    x = inputs.reshape(n, c, hw)
    t = targets.reshape(n, 1, hw).astype(jnp.int32)

    itemsize = jnp.dtype(x.dtype).itemsize
    if hw * c * itemsize <= max_block_bytes:
        tile_hw = hw                               # single full-width tile
    else:                                          # largest lane-multiple tile
        tile_hw = max(_LANES,
                      (max_block_bytes // (c * itemsize)) // _LANES * _LANES)

    grid_t = pl.cdiv(hw, tile_hw)
    needs_mask = (hw % tile_hw) != 0

    kernel = functools.partial(_ce_partial_kernel,
                               tile_hw=tile_hw, hw=hw, needs_mask=needs_mask)

    partials = pl.pallas_call(
        kernel,
        out_shape=jax.ShapeDtypeStruct((n, grid_t, 1, _LANES), jnp.float32),
        grid_spec=pltpu.PrefetchScalarGridSpec(
            num_scalar_prefetch=0,
            grid=(n, grid_t),
            in_specs=[
                pl.BlockSpec((1, c, tile_hw), lambda b, j: (b, 0, j)),
                pl.BlockSpec((1, 1, tile_hw), lambda b, j: (b, 0, j)),
            ],
            out_specs=pl.BlockSpec((1, 1, 1, _LANES), lambda b, j: (b, j, 0, 0)),
        ),
        compiler_params=pltpu.CompilerParams(
            dimension_semantics=("parallel", "parallel"),
            vmem_limit_bytes=32 * 1024 * 1024),
    )(x, t)

    loss_sum = jnp.sum(partials[:, :, 0, 0])
    return (loss_sum / jnp.float32(n * hw)).astype(jnp.float32)


def _reference_loss(inputs, targets):
    n, c, h, w = inputs.shape
    x = jnp.transpose(inputs, (0, 2, 3, 1)).reshape(-1, c).astype(jnp.float32)
    t = targets.reshape(-1)
    logp = jax.nn.log_softmax(x, axis=-1)
    nll = -jnp.take_along_axis(logp, t[:, None], axis=-1)[:, 0]
    return jnp.mean(nll)


if __name__ == "__main__":
    key = jax.random.PRNGKey(0)

    # Check 1: small canonical shape, single full-width tile.
    k1, k2 = jax.random.split(key)
    N, C, H, W = 2, 4, 16, 16
    inputs = jax.random.normal(k1, (N, C, H, W), dtype=jnp.float32)
    targets = jax.random.randint(k2, (N, H, W), 0, C, dtype=jnp.int32)

    loss = jax.block_until_ready(cross_entropy_loss_2d(inputs, targets))
    ref = _reference_loss(inputs, targets)
    assert jnp.allclose(loss, ref, atol=1e-5, rtol=1e-5), (loss, ref)

    # Check 2: force multiple HW tiles + ragged last tile (masked path).
    k3, k4 = jax.random.split(k1)
    N2, C2, H2, W2 = 2, 4, 16, 17                 # HW = 272, not a 128 multiple
    inputs2 = jax.random.normal(k3, (N2, C2, H2, W2), dtype=jnp.float32)
    targets2 = jax.random.randint(k4, (N2, H2, W2), 0, C2, dtype=jnp.int32)

    loss2 = jax.block_until_ready(
        cross_entropy_loss_2d(inputs2, targets2, max_block_bytes=4096))
    ref2 = _reference_loss(inputs2, targets2)
    assert jnp.allclose(loss2, ref2, atol=1e-5, rtol=1e-5), (loss2, ref2)

    print("KERNEL_OK")
</pallas_src>

<mosaic_0001>
module attributes {stable_mosaic.version = 11 : i64} {
  func.func @_ce_partial_kernel(%arg0: i32, %arg1: i32, %arg2: memref<1x4x256xf32, #tpu.memory_space<vmem>>, %arg3: memref<1x1x256xi32, #tpu.memory_space<vmem>>, %arg4: memref<1x1x1x128xf32, #tpu.memory_space<vmem>>) attributes {dimension_semantics = [#tpu.dimension_semantics<parallel>, #tpu.dimension_semantics<parallel>], iteration_bounds = array<i64: 2, 1>, scalar_prefetch = 0 : i64, scratch_operands = 0 : i64, tpu.core_type = #tpu.core_type<tc>, window_params = [{transform_indices = @transform_0, window_bounds = array<i64: 1, 4, 256>}, {transform_indices = @transform_1, window_bounds = array<i64: 1, 1, 256>}, {transform_indices = @transform_2, window_bounds = array<i64: 1, 1, 1, 128>}]} {
    %c0 = arith.constant 0 : index
    %c0_0 = arith.constant 0 : index
    %c0_1 = arith.constant 0 : index
    %0 = vector.load %arg2[%c0, %c0_0, %c0_1] : memref<1x4x256xf32, #tpu.memory_space<vmem>>, vector<1x4x256xf32>
    %c0_2 = arith.constant 0 : index
    %c0_3 = arith.constant 0 : index
    %c0_4 = arith.constant 0 : index
    %1 = vector.load %arg3[%c0_2, %c0_3, %c0_4] : memref<1x1x256xi32, #tpu.memory_space<vmem>>, vector<1x1x256xi32>
    %cst = arith.constant dense<0xFF800000> : vector<1x256xf32>
    %2 = vector.multi_reduction <maximumf>, %0, %cst [1] : vector<1x4x256xf32> to vector<1x256xf32>
    %3 = vector.shape_cast %2 : vector<1x256xf32> to vector<1x1x256xf32>
    %4 = vector.broadcast %3 : vector<1x1x256xf32> to vector<1x4x256xf32>
    %5 = arith.subf %0, %4 : vector<1x4x256xf32>
    %6 = math.exp %5 : vector<1x4x256xf32>
    %cst_5 = arith.constant dense<0.000000e+00> : vector<1x256xf32>
    %7 = vector.multi_reduction <add>, %6, %cst_5 [1] : vector<1x4x256xf32> to vector<1x256xf32>
    %8 = vector.shape_cast %7 : vector<1x256xf32> to vector<1x1x256xf32>
    %9 = tpu.iota {dimensions = array<i32: 1>} : vector<1x4x256xi32>
    %10 = vector.broadcast %1 : vector<1x1x256xi32> to vector<1x4x256xi32>
    %11 = arith.cmpi eq, %9, %10 : vector<1x4x256xi32>
    %cst_6 = arith.constant 0.000000e+00 : f32
    %12 = vector.broadcast %cst_6 : f32 to vector<1x4x256xf32>
    %13 = arith.select %11, %5, %12 : vector<1x4x256xi1>, vector<1x4x256xf32>
    %cst_7 = arith.constant dense<0.000000e+00> : vector<1x256xf32>
    %14 = vector.multi_reduction <add>, %13, %cst_7 [1] : vector<1x4x256xf32> to vector<1x256xf32>
    %15 = vector.shape_cast %14 : vector<1x256xf32> to vector<1x1x256xf32>
    %16 = math.log %8 : vector<1x1x256xf32>
    %17 = arith.subf %16, %15 : vector<1x1x256xf32>
    %18 = vector.shape_cast %17 : vector<1x1x256xf32> to vector<1x1x1x256xf32>
    %cst_8 = arith.constant dense<0.000000e+00> : vector<1xf32>
    %19 = vector.multi_reduction <add>, %18, %cst_8 [1, 2, 3] : vector<1x1x1x256xf32> to vector<1xf32>
    %20 = vector.shape_cast %19 : vector<1xf32> to vector<1x1x1x1xf32>
    %21 = vector.extract %20[0, 0, 0, 0] : f32 from vector<1x1x1x1xf32>
    %22 = vector.broadcast %21 : f32 to vector<1x1x1x128xf32>
    %c0_9 = arith.constant 0 : index
    %c0_10 = arith.constant 0 : index
    %c0_11 = arith.constant 0 : index
    %c0_12 = arith.constant 0 : index
    %23 = vector.load %arg4[%c0_9, %c0_10, %c0_11, %c0_12] : memref<1x1x1x128xf32, #tpu.memory_space<vmem>>, vector<1x1x1x128xf32>
    tpu.vector_store %arg4[%c0_9, %c0_10, %c0_11, %c0_12], %22 {strides = array<i32>} : memref<1x1x1x128xf32, #tpu.memory_space<vmem>>, vector<1x1x1x128xf32>,
    return
  }
  func.func @transform_0(%arg0: i32, %arg1: i32) -> (i32, i32, i32) {
    %c0_i32 = arith.constant 0 : i32
    %c0_i32_0 = arith.constant 0 : i32
    return %arg0, %c0_i32, %arg1 : i32, i32, i32
  }
  func.func @transform_1(%arg0: i32, %arg1: i32) -> (i32, i32, i32) {
    %c0_i32 = arith.constant 0 : i32
    %c0_i32_0 = arith.constant 0 : i32
    return %arg0, %c0_i32, %arg1 : i32, i32, i32
  }
  func.func @transform_2(%arg0: i32, %arg1: i32) -> (i32, i32, i32, i32) {
    %c0_i32 = arith.constant 0 : i32
    %c0_i32_0 = arith.constant 0 : i32
    %c0_i32_1 = arith.constant 0 : i32
    return %arg0, %arg1, %c0_i32, %c0_i32_0 : i32, i32, i32, i32
  }
}

</mosaic_0001>

<bundles_post_ra>
// kernel: tpu_custom_call.1
= control target key start
LH: loop header
LB: loop body
LE: loop exit
PB: predicated region body
PF: predicated region fallthrough
CT: control target
= control target key end

     0   :  { %7 = vsyncpa [#allocation3], 0  ;;  %s840_s0 = inlined_call_operand.hbm [shape: f32[2,4,256], index: 0, kind: input, shape index: {}]   ;;  %s841_s1 = inlined_call_operand.hbm [shape: s32[2,1,256], index: 1, kind: input, shape index: {}]   ;;  %s842_s2 = inlined_call_operand.hbm [shape: f32[2,1,1,128], index: 2, kind: output, shape index: {}]  }
   0x1   :  { %9 = vsyncpa [#allocation3 + $0x1], 0 }
   0x2   :  { %10 = vsyncpa [#allocation6], 0 }
   0x3   :  { %12 = vsyncpa [#allocation6 + $0x1], 0 }
   0x4   :  { %13 = vsyncpa [#allocation4], 0 }
   0x5   :  { %15 = vsyncpa [#allocation4 + $0x1], 0  ;;  %s694_s9 = smov 0   ;;  %s696_s10 = smov 0  }
   0x6   :  { %s698_s11 = smov 0   ;;  %s700_s12 = smov 0  }
   0x7   :  { %s702_s13 = smov 0   ;;  %s704_s14 = smov 0  }
   0x8 LB: > { %s441_s15 = sadd.s32 4294967295, %s677_s14   ;;  %s442_s16 = sadd.s32 4294967294, %s677_s14   ;;  %s677_s14 = sphi %s704_s14, %s21_s14   ;;  %s673_s13 = sphi %s702_s13, %s852_s13   ;;  %s669_s12 = sphi %s700_s12, %s851_s12   ;;  %s665_s11 = sphi %s698_s11, %s850_s11   ;;  %s661_s10 = sphi %s696_s10, %s849_s10   ;;  %s657_s9 = sphi %s694_s9, %s848_s9  }
   0x9   : > { %s33_s17 = sadd.s32 1, %s673_s13  ;;  %s42_s18 = sadd.s32 1, %s665_s11 }
   0xa   : > { %p35_p0 = scmp.ge.s32.totalorder %s33_s17, 2  ;;  %p49_p1 = scmp.ne.s32.totalorder %s665_s11, %s661_s10 }
   0xb   : > { %p50_p2 = scmp.eq.s32.totalorder %s677_s14, 0  ;;  %p55_p3 = scmp.ne.s32.totalorder %s661_s10, %s657_s9 }
   0xc   : > { %s854_s17 = smov (%p35_p0, %s33_s17), 0  ;;  %p56_p5 = scmp.eq.s32.totalorder %s441_s15, 0 }
   0xd   : > { %p735_p4 = por %p50_p2, %p49_p1  ;;  %s37_s20 = ssub.s32 %s673_s13, %s854_s17 }
   0xe   : > { %p109_p6 = scmp.eq.s32.totalorder %s441_s15, 1  ;;  %p40_p7 = scmp.eq.s32.totalorder %s37_s20, 0 }
   0xf   : > { %p741_p8 = por %p56_p5, %p55_p3  ;;  %p115_p10 = scmp.eq.s32.totalorder %s442_s16, 1 }
  0x10   : > { %p745_p9 = por %p109_p6, %p49_p1  ;;  %p444_p12 = scmp.ge.s32.totalorder %s677_s14, 2 }
  0x11   : > { %s750_s23 = scalar_select %p40_p7, %s665_s11, %s42_s18  }
  0x12   : > { %p752_p11 = por %p115_p10, %p55_p3  ;;  %p475_p13 = scmp.lt.s32.totalorder %s677_s14, 2 }
  0x13   : > { %s135_s25 = sand.u32 1, %s665_s11   ;;  %s455_s27 = sshll.u32 %s673_s13, 3 }
  0x14   : > { %s445_s26 = sshll.u32 %s135_s25, 3  ;;  %s146_s30 = scalar_lea.hbm %s840_s0, %s455_s27 }
  0x15   : > { %s139_s3 = scalar_lea.vmem [#allocation2], %s445_s26  ;;  %s148_s5 = sshll.u32 %s146_s30, 4  ;;  %s149_s5 = int_to_ptr.hbm [resolvable:$true] %s148_s5 }
  0x16   : > { %s150_s4 = sshll.u32 %s139_s3, 4  ;;  %p765_p0 = pnand %p475_p13, %p735_p4  ;;  %s151_s4 = int_to_ptr.vmem [resolvable:$true] %s150_s4 }
  0x17   : > { %p450_p1 = scmp.ge.s32.totalorder %s677_s14, 1  ;;  %p176_p2 = scmp.lt.s32.totalorder %s677_s14, 3 }
  0x18   : > { %s136_s7 = scalar_lea.sflag [#allocation3], %s135_s25  ;;  %s448_s8 = sshll.u32 %s135_s25, 1 }
  0x19   : > { %467 = dma.hbm_to_vmem [thread:$0]  (!%p765_p0), %s149_s5, 128, %s151_s4, %s136_s7  }
  0x1a   : > { %p177_p3 = pnand %p450_p1, %p176_p2  ;;  %s449_s15 = sshll.u32 %s673_s13, 1 }
  0x1b   : > { %s167_s20 = scalar_lea.hbm %s841_s1, %s449_s15  ;;  %s161_s26 = scalar_lea.vmem [#allocation5], %s448_s8 }
  0x1c   : > { %s171_s19 = sshll.u32 %s161_s26, 4  ;;  %s169_s27 = sshll.u32 %s167_s20, 4  ;;  %s172_s19 = int_to_ptr.vmem [resolvable:$true] %s171_s19  ;;  %s170_s27 = int_to_ptr.hbm [resolvable:$true] %s169_s27 }
  0x1d   : > { %s158_s28 = scalar_lea.sflag [#allocation6], %s135_s25  ;;  %180 = sbr.rel (%p177_p3) target bundleno = 292 (0x124), region = 28 }
  0x1e   : > { %470 = dma.hbm_to_vmem [thread:$0]  (!%p765_p0), %s170_s27, 32, %s172_s19, %s158_s28  }
  0x1f   : > { %s780_s29 = sand.u32 (!%p177_p3), 1, %s661_s10  }
  0x20   : > { %s451_s30 = sshll.u32 (!%p177_p3), %s780_s29, 3  ;;  %s183_s3 = scalar_lea.sflag (!%p177_p3), [#allocation3], %s780_s29 }
  0x21   : > { %s186_s4 = scalar_lea.vmem (!%p177_p3), [#allocation2], %s451_s30 }
  0x22   : > { %644 = dma.done.wait (%p741_p8), %s183_s3, 128  }
  0x23   : > { %646 = vsyncadd (%p741_p8), %s183_s3, 4294967168  ;;  %s452_s25 = sshll.u32 %s780_s29, 1  ;;  %s193_s5 = scalar_lea.sflag [#allocation6], %s780_s29 }
  0x24   : > { %s196_s6 = scalar_lea.vmem [#allocation5], %s452_s25 }
  0x25   : > { %648 = dma.done.wait (%p741_p8), %s193_s5, 32  }
  0x26   : > { %650 = vsyncadd (%p741_p8), %s193_s5, 4294967264  ;;  %v224_v0 = vld [vmem:[%s186_s4] sm:$0xff]  ;;  %vm232_vm0 = vcmask 1043456   ;;  %v275_v22 = vlaneseq  ;;  %v225_v23 = vld [vmem:[%s196_s6] sm:$0x3]  ;;  %vm309_vm3 = vcmask 1040384   ;;  %s334_s8 = scalar_lea.hbm %s842_s2, %s669_s12 }
  0x27   : > { %227 = vst [vmem:[#allocation1] ss:$2 sm:$0xff] %v224_v0  ;;  %v277_v31 = vperm.slane %v225_v23, 0  ;;  %v278_v32 = vperm.slane %v225_v23, 1  ;;  %s221_s15 = scalar_lea.vmem [#allocation7], %s780_s29  ;;  %s338_s18 = sshll.u32 %s334_s8, 4  ;;  %s339_s18 = int_to_ptr.hbm [resolvable:$true] %s338_s18 }
  0x28   : > { %v276_v28 = vshrl.u32 %v275_v22, 7  ;;  %s336_s16 = sshll.u32 %s221_s15, 4  ;;  %s325_s26 = scalar_lea.sflag [#allocation4], %s780_s29  ;;  %s337_s16 = int_to_ptr.vmem [resolvable:$true] %s336_s16 }
  0x29   : > { %s605_s19 = sshra.s32 %s339_s18, 4  ;;  %s611_s12 = scalar_lea.hbm %s842_s2, 2  ;;  %s606_s19 = int_to_ptr.hbm [resolvable:$true] %s605_s19 }
  0x2a   : > { %vm279_vm1 = vcmp.eq.s32.totalorder %v276_v28, %v277_v31  ;;  %vm280_vm2 = vcmp.eq.s32.totalorder %v276_v28, %v278_v32  ;;  %s607_s27 = scalar_lea.hbm %s606_s19, 1  ;;  %p612_p7 = scmp.lt.s32.totalorder %s606_s19, %s842_s2 }
  0x2b   : > { %p608_p4 = scmp.ne.s32.totalorder %s606_s19, %s607_s27  ;;  %p613_p8 = scmp.lt.s32.totalorder %s611_s12, %s607_s27 }
  0x2d   : > { %p609_p5 = pnand %p608_p4, %p745_p9  ;;  %p614_p10 = por %p613_p8, %p612_p7 }
  0x2e   : > { %v228_v1 = vld.sshfl [vmem:[#allocation1] sm:$0xff pattern:$0x75316420]  ;;  %v229_v2 = vld.sshfl [vmem:[#allocation1 + $0x8] sm:$0xff pattern:$0x75316420] }
  0x2f   : > { %v233_v3 = vsel %vm232_vm0, %v228_v1, -inf  ;;  %v240_v4 = vsel %vm232_vm0, %v229_v2, -inf  ;;  %p610_p6 = pneg %p609_p5 }
  0x30   : > { %v234_v5 = vrot.slane %v233_v3, 4  ;;  %v241_v6 = vrot.slane %v240_v4, 4 }
  0x31   : > { %p615_p13 = pnand %p614_p10, %p610_p6 }
  0x32   : > { %v235_v7 = vmax.f32 %v233_v3, %v234_v5  ;;  %v242_v8 = vmax.f32 %v240_v4, %v241_v6 }
  0x34   : > { %v236_v9 = vrot.slane %v235_v7, 2  ;;  %v243_v10 = vrot.slane %v242_v8, 2 }
  0x36   : > { %v237_v11 = vmax.f32 %v235_v7, %v236_v9  ;;  %v244_v12 = vmax.f32 %v242_v8, %v243_v10 }
  0x38   : > { %v238_v13 = vrot.slane %v237_v11, 1  ;;  %v245_v14 = vrot.slane %v244_v12, 1 }
  0x3a   : > { %v239_v15 = vmax.f32 %v237_v11, %v238_v13  ;;  %v246_v16 = vmax.f32 %v244_v12, %v245_v14 }
  0x3c   : > { %v249_v17 = vrot.slane %v246_v16, 4 }
  0x3e   : > { %v250_v18 = vsel %vm232_vm0, %v239_v15, %v249_v17 }
  0x3f   : > { %v252_v19 = vsub.f32 %v224_v0, %v250_v18 }
  0x41   : > { %v253_v20 = vmul.f32 1.442695, %v252_v19 }
  0x43   : > { %525 = vpow2.f32 %v253_v20 }
  0x49   : > { %v526_v21 = vpop.eup %525 }
  0x4a   : > { %256 = vst [vmem:[#allocation1] ss:$2 sm:$0xff] %v526_v21 }
  0x51   : > { %v257_v24 = vld.sshfl [vmem:[#allocation1] sm:$0xff pattern:$0x75316420]  ;;  %v258_v25 = vld.sshfl [vmem:[#allocation1 + $0x8] sm:$0xff pattern:$0x75316420] }
  0x52   : > { %v261_v26 = vsel %vm232_vm0, %v257_v24, 0.0  ;;  %v268_v27 = vsel %vm232_vm0, %v258_v25, 0.0  ;;  %282 = vst [vmem:[#allocation1] ss:$2 sm:$0xff] %v252_v19 }
  0x53   : > { %v262_v29 = vrot.slane %v261_v26, 4  ;;  %v269_v30 = vrot.slane %v268_v27, 4 }
  0x55   : > { %v263_v33 = vadd.f32 %v262_v29, %v261_v26  ;;  %v270_v34 = vadd.f32 %v269_v30, %v268_v27 }
  0x57   : > { %v264_v35 = vrot.slane %v263_v33, 2  ;;  %v271_v36 = vrot.slane %v270_v34, 2 }
  0x59   : > { %v265_v37 = vadd.f32 %v264_v35, %v263_v33  ;;  %v272_v38 = vadd.f32 %v271_v36, %v270_v34  ;;  %v283_v39 = vld.sshfl [vmem:[#allocation1] sm:$0xff pattern:$0x75316420]  ;;  %v284_v40 = vld.sshfl [vmem:[#allocation1 + $0x8] sm:$0xff pattern:$0x75316420] }
  0x5a   : > { %v287_v41 = vsel %vm279_vm1, %v283_v39, 0.0  ;;  %v288_v42 = vsel %vm280_vm2, %v284_v40, 0.0 }
  0x5b   : > { %v266_v43 = vrot.slane %v265_v37, 1  ;;  %v273_v44 = vrot.slane %v272_v38, 1  ;;  %v289_v45 = vsel %vm232_vm0, %v287_v41, 0.0  ;;  %v296_v46 = vsel %vm232_vm0, %v288_v42, 0.0 }
  0x5c   : > { %v290_v47 = vrot.slane %v289_v45, 4  ;;  %v297_v48 = vrot.slane %v296_v46, 4 }
  0x5d   : > { %v267_v49 = vadd.f32 %v266_v43, %v265_v37  ;;  %v274_v50 = vadd.f32 %v273_v44, %v272_v38 }
  0x5e   : > { %v291_v51 = vadd.f32 %v290_v47, %v289_v45  ;;  %v298_v52 = vadd.f32 %v297_v48, %v296_v46 }
  0x5f   : > { %527 = vlog2.f32 %v267_v49 }
  0x60   : > { %v292_v53 = vrot.slane %v291_v51, 2  ;;  %v299_v54 = vrot.slane %v298_v52, 2  ;;  %529 = vlog2.f32 %v274_v50 }
  0x62   : > { %v293_v55 = vadd.f32 %v292_v53, %v291_v51  ;;  %v300_v56 = vadd.f32 %v299_v54, %v298_v52 }
  0x64   : > { %v294_v57 = vrot.slane %v293_v55, 1  ;;  %v301_v58 = vrot.slane %v300_v56, 1 }
  0x65   : > { %v528_v59 = vpop.eup %527 }
  0x66   : > { %v530_v60 = vpop.eup %529  ;;  %v295_v61 = vadd.f32 %v294_v57, %v293_v55  ;;  %v302_v62 = vadd.f32 %v301_v58, %v300_v56  ;;  %v304_v63 = vmul.f32 0.6931472, %v528_v59 }
  0x67   : > { %v306_v0 = vmul.f32 0.6931472, %v530_v60 }
  0x68   : > { %v307_v1 = vsub.f32 %v304_v63, %v295_v61 }
  0x69   : > { %v308_v2 = vsub.f32 %v306_v0, %v302_v62 }
  0x6a   : > { %v310_v3 = vsel %vm309_vm3, %v307_v1, 0.0 }
  0x6b   : > { %v311_v4 = vsel %vm309_vm3, %v308_v2, 0.0 }
  0x6c   : > { %v312_v5 = vadd.f32 %v311_v4, %v310_v3 }
  0x6e   : > { %313 = vadd.xlane.f32.xlu0 %v312_v5 }
  0xe1   : > { %v314_v6 = vpop.xlane.xlu0 %313 }
  0xe2   : > { %v315_v7 = vrot.slane %v314_v6, 4 }
  0xe4   : > { %v316_v8 = vadd.f32 %v315_v7, %v314_v6 }
  0xe6   : > { %v317_v9 = vrot.slane %v316_v8, 2 }
  0xe8   : > { %v318_v10 = vadd.f32 %v317_v9, %v316_v8 }
  0xea   : > { %v319_v11 = vrot.slane %v318_v10, 1 }
  0xec   : > { %v320_v12 = vadd.f32 %v319_v11, %v318_v10 }
  0xee   : > { %456 = vpush %v320_v12 }
 0x11f   : > { %s457_s20 = spop %456 }
 0x120   : > { %v322_v13 = vstv %s457_s20 }
 0x121   : > { %323 = vst [vmem:[%s221_s15] sm:$0x1] %v322_v13 }
 0x122   : > { %618 = shalt.err (!%p615_p13)
}
 0x123   : > { %462 = dma.vmem_to_hbm [thread:$0]  (%p745_p9), %s337_s16, 16, %s339_s18, %s325_s26  }
 0x124 PF: > { %s350_s29 = sand.u32 1, %s657_s9   ;;  %p472_p0 = pnand %p444_p12, %p752_p11 }
 0x125   : > { %s351_s25 = scalar_lea.sflag [#allocation4], %s350_s29 }
 0x126   : > { %p473_p1 = pneg %p472_p0 }
 0x128   : > { %652 = dma.done.wait (%p473_p1), %s351_s25, 16  }
 0x129   : > { %654 = vsyncadd (%p473_p1), %s351_s25, 4294967280  ;;  %s21_s14 = sadd.s32 1, %s677_s14   ;;  %s848_s9 = smov %s661_s10 }
 0x12a   : > { %p18_p2 = scmp.ge.s32.totalorder %s21_s14, 4   ;;  %s849_s10 = smov %s665_s11 }
 0x12b   : > { %s850_s11 = smov %s750_s23  ;;  %s851_s12 = smov %s673_s13 }
 0x12c   : > { %s852_s13 = smov %s854_s17  ;;  %20 = sbr.rel (!%p18_p2) target bundleno = 8 (0x8), region = 86 }
 0x131   :  { %356 = vsyncpa [#allocation3], 1 }
 0x132   :  { %358 = vsyncpa [#allocation3 + $0x1], 1 }
 0x133   :  { %359 = vsyncpa [#allocation6], 1 }
 0x134   :  { %361 = vsyncpa [#allocation6 + $0x1], 1 }
 0x135   :  { %362 = vsyncpa [#allocation4], 1 }
 0x136   :  { %364 = vsyncpa [#allocation4 + $0x1], 1 }

</bundles_post_ra>
